<compile_context>
chip_gen: v5e
topology: v5e:2x2
jax: 0.10.0
libtpu: 0.0.40
codegen_flags: <defaults>
</compile_context>

<pallas_src>
import functools
import math

import jax
import jax.numpy as jnp
import numpy as np
from jax import lax
from jax.experimental import pallas as pl
from jax.experimental.pallas import tpu as pltpu


def _i32(c):
    """Python int -> two's-complement int32 value (for hash constants)."""
    c &= 0xFFFFFFFF
    return c - (1 << 32) if c >= (1 << 31) else c


def _keep_mask(shape, threshold_i32, base_i32, row_offset):
    """Stateless keep-mask: splitmix32-style hash of the global (row, col) index.

    Pure jnp/lax int32 ops only (VPU), so it works both under Mosaic and in
    interpret mode.  The mask depends on the *global* row index, so it is
    independent of the block_b tiling choice.
    """
    rows = lax.broadcasted_iota(jnp.int32, shape, 0) + row_offset
    cols = lax.broadcasted_iota(jnp.int32, shape, 1)
    x = rows * jnp.int32(_i32(0x9E3779B1))
    x = x ^ (cols * jnp.int32(_i32(0x85EBCA77)))
    x = x ^ jnp.int32(base_i32)
    x = x ^ lax.shift_right_logical(x, jnp.int32(16))
    x = x * jnp.int32(_i32(0x7FEB352D))
    x = x ^ lax.shift_right_logical(x, jnp.int32(15))
    x = x * jnp.int32(_i32(0x846CA68B))
    x = x ^ lax.shift_right_logical(x, jnp.int32(16))
    return x >= jnp.int32(threshold_i32)


def _dropout(h, *, training, dropout_p, threshold_i32, seed, salt, row_offset):
    """Mask-and-zero dropout; the 1/keep rescale is folded into the next layer's
    weights in the wrapper."""
    # TODO(synk): cannot bit-match torch.nn.Dropout's RNG stream (stateless
    # hash PRNG instead of torch's generator).
    if (not training) or dropout_p <= 0.0:
        return h
    if dropout_p >= 1.0:
        return jnp.zeros_like(h)
    base = _i32((int(seed) * 0x9E3779B9 + int(salt) * 0x6A09E667) & 0xFFFFFFFF)
    keep = _keep_mask(h.shape, threshold_i32, base, row_offset)
    return jnp.where(keep, h, 0.0)


def mlp_kernel(u_ref, v_ref,
               w1u_ref, w1v_ref, b1_ref,
               w2_ref, b2_ref,
               w3_ref, b3_ref,
               w4r_ref, b4_ref,
               o_ref, *,
               matmul_dtype, training, dropout_p, threshold_i32, seed):
    block_b = o_ref.shape[0]
    row0 = pl.program_id(0) * block_b
    drop = functools.partial(_dropout, training=training, dropout_p=dropout_p,
                             threshold_i32=threshold_i32, seed=seed,
                             row_offset=row0)

    u = u_ref[...].astype(matmul_dtype)
    v = v_ref[...].astype(matmul_dtype)

    # fc1:  concat([u, v], 1) @ w1  ==  u @ w1[:d] + v @ w1[d:]
    # (concat stays in the kernel; no wrapper-side HBM concat/pad/cast pass)
    h = (jnp.dot(u, w1u_ref[...], preferred_element_type=jnp.float32)
         + jnp.dot(v, w1v_ref[...], preferred_element_type=jnp.float32))
    h = jnp.maximum(h + b1_ref[...], 0.0)
    h = drop(h, salt=1)

    # fc2 + relu (+ dropout)
    h = jnp.dot(h.astype(matmul_dtype), w2_ref[...],
                preferred_element_type=jnp.float32)
    h = jnp.maximum(h + b2_ref[...], 0.0)
    h = drop(h, salt=2)

    # fc3 + relu (+ dropout)
    h = jnp.dot(h.astype(matmul_dtype), w3_ref[...],
                preferred_element_type=jnp.float32)
    h = jnp.maximum(h + b3_ref[...], 0.0)
    h = drop(h, salt=3)

    # fc4 (out_features=1): VPU multiply + lane reduce in f32.  Result is a
    # (block_b, 1) column — the natural layout of the reduce — stored as-is
    # (4 B/row of HBM writeback, no transpose/relayout).
    out = jnp.sum(h * w4r_ref[...], axis=-1, keepdims=True) + b4_ref[...]
    o_ref[...] = out.astype(o_ref.dtype)


def _round_up(x, m):
    return ((x + m - 1) // m) * m


def _choose_block_b(B, max_block=1024):
    """Large tiles amortize per-grid-step overhead; cap at ~B/2 (rounded to 128)
    so moderate batches still give >= 2 tiles for v7x's two TensorCores."""
    bb = min(max_block, _round_up(max(pl.cdiv(B, 2), 1), 128))
    bb = min(bb, _round_up(B, 8))
    return max(bb, 8)


def dropout_content_based_forward(user_profile, item_profile, params, *,
                                  training=False, dropout_p=0.5, seed=0,
                                  block_b=None, matmul_dtype=jnp.bfloat16):
    """Pallas forward pass. user_profile/item_profile: [B, input_dim] f32.
    Returns [B, 1] f32."""
    B, d = user_profile.shape
    assert item_profile.shape == (B, d)
    w1, b1, w2, b2, w3, b3, w4, b4 = params

    if block_b is None:
        block_b = _choose_block_b(B)
    n_tiles = pl.cdiv(B, block_b)

    # Fold inverted-dropout's 1/keep_prob rescale into the *next* layer's
    # weights (mathematically identical; biases untouched).
    if training and 0.0 < float(dropout_p) < 1.0:
        inv_keep = 1.0 / (1.0 - float(dropout_p))
        w2 = w2 * inv_keep
        w3 = w3 * inv_keep
        w4 = w4 * inv_keep

    # Signed threshold such that P(uniform int32 hash >= t) = 1 - p.
    threshold_i32 = int(math.floor(float(dropout_p) * (2.0 ** 32))) - 2 ** 31
    threshold_i32 = max(-(2 ** 31), min(threshold_i32, 2 ** 31 - 1))

    # Weight-side reshapes/casts are tiny (~100 KB once per call); activations
    # are never touched by XLA outside the kernel.
    w1u = w1[:d].astype(matmul_dtype)               # (d, 256)
    w1v = w1[d:].astype(matmul_dtype)               # (d, 256)
    w2c = w2.astype(matmul_dtype)                   # (256, 128)
    w3c = w3.astype(matmul_dtype)                   # (128, 64)
    w4_row = w4.reshape(1, -1).astype(jnp.float32)  # (1, 64) — VPU path stays f32
    b1r = b1.reshape(1, -1).astype(jnp.float32)
    b2r = b2.reshape(1, -1).astype(jnp.float32)
    b3r = b3.reshape(1, -1).astype(jnp.float32)
    b4r = b4.reshape(1, -1).astype(jnp.float32)     # (1, 1)

    kernel = functools.partial(
        mlp_kernel, matmul_dtype=matmul_dtype, training=bool(training),
        dropout_p=float(dropout_p), threshold_i32=threshold_i32, seed=int(seed))

    def full_spec(a):
        return pl.BlockSpec(a.shape, lambda i, _nd=a.ndim: (0,) * _nd)

    flops = 2 * B * (2 * d * 256 + 256 * 128 + 128 * 64 + 64)
    weight_bytes = sum(int(np.prod(a.shape)) * a.dtype.itemsize
                       for a in (w1u, w1v, b1r, w2c, b2r, w3c, b3r, w4_row, b4r))
    bytes_accessed = B * (2 * d * 4 + 4) + weight_bytes

    out = pl.pallas_call(
        kernel,
        out_shape=jax.ShapeDtypeStruct((B, 1), jnp.float32),
        grid=(n_tiles,),
        in_specs=[
            pl.BlockSpec((block_b, d), lambda i: (i, 0)),   # user tile
            pl.BlockSpec((block_b, d), lambda i: (i, 0)),   # item tile
            full_spec(w1u), full_spec(w1v), full_spec(b1r),
            full_spec(w2c), full_spec(b2r),
            full_spec(w3c), full_spec(b3r),
            full_spec(w4_row), full_spec(b4r),
        ],
        out_specs=pl.BlockSpec((block_b, 1), lambda i: (i, 0)),
        compiler_params=pltpu.CompilerParams(
            dimension_semantics=("parallel",)),   # v7x: tiles across both TCs
        cost_estimate=pl.CostEstimate(flops=flops, transcendentals=0,
                                      bytes_accessed=bytes_accessed),
    )(user_profile, item_profile,
      w1u, w1v, b1r, w2c, b2r, w3c, b3r, w4_row, b4r)

    return out


def init_params(key, input_dim):
    """Deterministic synthetic params; weights stored [in, out], biases [1, out]."""
    dims = [(input_dim * 2, 256), (256, 128), (128, 64), (64, 1)]
    params = []
    for (fan_in, fan_out) in dims:
        key, kw, kb = jax.random.split(key, 3)
        bound = 1.0 / np.sqrt(fan_in)      # PyTorch nn.Linear default init range
        w = jax.random.uniform(kw, (fan_in, fan_out), jnp.float32, -bound, bound)
        b = jax.random.uniform(kb, (1, fan_out), jnp.float32, -bound, bound)
        params += [w, b]
    return tuple(params)


def reference_forward(user_profile, item_profile, params,
                      matmul_dtype=jnp.float32):
    """Pure-JAX reference (eval mode: dropout = identity)."""
    w1, b1, w2, b2, w3, b3, w4, b4 = params

    def mm(a, w):
        return jnp.dot(a.astype(matmul_dtype), w.astype(matmul_dtype),
                       preferred_element_type=jnp.float32)

    x = jnp.concatenate([user_profile, item_profile], axis=1)
    x = jnp.maximum(mm(x, w1) + b1, 0.0)
    x = jnp.maximum(mm(x, w2) + b2, 0.0)
    x = jnp.maximum(mm(x, w3) + b3, 0.0)
    return x @ w4 + b4        # fc4 in f32 (mirrors kernel's f32 VPU reduce)


if __name__ == "__main__":
    input_dim = 64

    key = jax.random.PRNGKey(0)
    key, kp = jax.random.split(key)
    params = init_params(kp, input_dim)

    # --- small batch (single tile), strict f32 matmuls ---
    batch = 8
    key, ku, ki = jax.random.split(key, 3)
    user_profile = jax.random.normal(ku, (batch, input_dim), jnp.float32)
    item_profile = jax.random.normal(ki, (batch, input_dim), jnp.float32)

    out_f32 = jax.block_until_ready(dropout_content_based_forward(
        user_profile, item_profile, params,
        training=False, matmul_dtype=jnp.float32))
    ref_f32 = reference_forward(user_profile, item_profile, params,
                                matmul_dtype=jnp.float32)
    np.testing.assert_allclose(np.asarray(out_f32), np.asarray(ref_f32),
                               rtol=1e-4, atol=1e-4)
    assert out_f32.shape == (batch, 1)

    # --- non-multiple batch (2 tiles + partial last tile), bf16 matmuls ---
    batch2 = 300
    key, ku2, ki2 = jax.random.split(key, 3)
    u2 = jax.random.normal(ku2, (batch2, input_dim), jnp.float32)
    i2 = jax.random.normal(ki2, (batch2, input_dim), jnp.float32)

    out_bf16 = jax.block_until_ready(dropout_content_based_forward(
        u2, i2, params, training=False, matmul_dtype=jnp.bfloat16))
    ref_bf16 = reference_forward(u2, i2, params, matmul_dtype=jnp.bfloat16)
    np.testing.assert_allclose(np.asarray(out_bf16), np.asarray(ref_bf16),
                               rtol=5e-3, atol=5e-3)
    assert out_bf16.shape == (batch2, 1)

    # --- training with p=0.0 must equal eval exactly (dropout gated off) ---
    out_p0 = jax.block_until_ready(dropout_content_based_forward(
        u2, i2, params, training=True, dropout_p=0.0,
        matmul_dtype=jnp.bfloat16))
    np.testing.assert_allclose(np.asarray(out_p0), np.asarray(out_bf16),
                               rtol=0.0, atol=0.0)

    # --- training-mode smoke test (stateless hash dropout path) ---
    out_train = jax.block_until_ready(dropout_content_based_forward(
        u2, i2, params, training=True, dropout_p=0.5, seed=1234,
        matmul_dtype=jnp.bfloat16))
    assert out_train.shape == (batch2, 1)
    assert bool(jnp.all(jnp.isfinite(out_train)))

    print("KERNEL_OK")
</pallas_src>

<mosaic_0001>
module attributes {stable_mosaic.version = 11 : i64} {
  func.func @mlp_kernel(%arg0: i32, %arg1: memref<8x64xf32, #tpu.memory_space<vmem>>, %arg2: memref<8x64xf32, #tpu.memory_space<vmem>>, %arg3: memref<64x256xf32, #tpu.memory_space<vmem>>, %arg4: memref<64x256xf32, #tpu.memory_space<vmem>>, %arg5: memref<1x256xf32, #tpu.memory_space<vmem>>, %arg6: memref<256x128xf32, #tpu.memory_space<vmem>>, %arg7: memref<1x128xf32, #tpu.memory_space<vmem>>, %arg8: memref<128x64xf32, #tpu.memory_space<vmem>>, %arg9: memref<1x64xf32, #tpu.memory_space<vmem>>, %arg10: memref<1x64xf32, #tpu.memory_space<vmem>>, %arg11: memref<1x1xf32, #tpu.memory_space<vmem>>, %arg12: memref<8x1xf32, #tpu.memory_space<vmem>>) attributes {dimension_semantics = [#tpu.dimension_semantics<parallel>], iteration_bounds = array<i64: 1>, scalar_prefetch = 0 : i64, scratch_operands = 0 : i64, tpu.core_type = #tpu.core_type<tc>, window_params = [{transform_indices = @transform_0, window_bounds = array<i64: 8, 64>}, {transform_indices = @transform_1, window_bounds = array<i64: 8, 64>}, {pipeline_mode = #tpu.pipeline_mode<synchronous>, transform_indices = @transform_2, window_bounds = array<i64: 64, 256>}, {pipeline_mode = #tpu.pipeline_mode<synchronous>, transform_indices = @transform_3, window_bounds = array<i64: 64, 256>}, {pipeline_mode = #tpu.pipeline_mode<synchronous>, transform_indices = @transform_4, window_bounds = array<i64: 1, 256>}, {pipeline_mode = #tpu.pipeline_mode<synchronous>, transform_indices = @transform_5, window_bounds = array<i64: 256, 128>}, {pipeline_mode = #tpu.pipeline_mode<synchronous>, transform_indices = @transform_6, window_bounds = array<i64: 1, 128>}, {pipeline_mode = #tpu.pipeline_mode<synchronous>, transform_indices = @transform_7, window_bounds = array<i64: 128, 64>}, {pipeline_mode = #tpu.pipeline_mode<synchronous>, transform_indices = @transform_8, window_bounds = array<i64: 1, 64>}, {pipeline_mode = #tpu.pipeline_mode<synchronous>, transform_indices = @transform_9, window_bounds = array<i64: 1, 64>}, {pipeline_mode = #tpu.pipeline_mode<synchronous>, transform_indices = @transform_10, window_bounds = array<i64: 1, 1>}, {transform_indices = @transform_11, window_bounds = array<i64: 8, 1>}]} {
    %c0 = arith.constant 0 : index
    %c0_0 = arith.constant 0 : index
    %0 = vector.load %arg1[%c0, %c0_0] : memref<8x64xf32, #tpu.memory_space<vmem>>, vector<8x64xf32>
    %c0_1 = arith.constant 0 : index
    %c0_2 = arith.constant 0 : index
    %1 = vector.load %arg2[%c0_1, %c0_2] : memref<8x64xf32, #tpu.memory_space<vmem>>, vector<8x64xf32>
    %c0_3 = arith.constant 0 : index
    %c0_4 = arith.constant 0 : index
    %2 = vector.load %arg3[%c0_3, %c0_4] : memref<64x256xf32, #tpu.memory_space<vmem>>, vector<64x256xf32>
    %cst = arith.constant dense<0.000000e+00> : vector<8x256xf32>
    %3 = tpu.matmul %0, %2, %cst {dimension_numbers = #tpu.dot_dimension_numbers<[1], [0], [0], [1], [0, 0, 1, 1], [], []>} : vector<8x64xf32>, vector<64x256xf32>, vector<8x256xf32> -> vector<8x256xf32>
    %c0_5 = arith.constant 0 : index
    %c0_6 = arith.constant 0 : index
    %4 = vector.load %arg4[%c0_5, %c0_6] : memref<64x256xf32, #tpu.memory_space<vmem>>, vector<64x256xf32>
    %cst_7 = arith.constant dense<0.000000e+00> : vector<8x256xf32>
    %5 = tpu.matmul %1, %4, %cst_7 {dimension_numbers = #tpu.dot_dimension_numbers<[1], [0], [0], [1], [0, 0, 1, 1], [], []>} : vector<8x64xf32>, vector<64x256xf32>, vector<8x256xf32> -> vector<8x256xf32>
    %6 = arith.addf %3, %5 : vector<8x256xf32>
    %c0_8 = arith.constant 0 : index
    %c0_9 = arith.constant 0 : index
    %7 = vector.load %arg5[%c0_8, %c0_9] : memref<1x256xf32, #tpu.memory_space<vmem>>, vector<1x256xf32>
    %8 = vector.broadcast %7 : vector<1x256xf32> to vector<8x256xf32>
    %9 = arith.addf %6, %8 : vector<8x256xf32>
    %cst_10 = arith.constant 0.000000e+00 : f32
    %10 = vector.broadcast %cst_10 : f32 to vector<8x256xf32>
    %11 = arith.maximumf %9, %10 : vector<8x256xf32>
    %c0_11 = arith.constant 0 : index
    %c0_12 = arith.constant 0 : index
    %12 = vector.load %arg6[%c0_11, %c0_12] : memref<256x128xf32, #tpu.memory_space<vmem>>, vector<256x128xf32>
    %cst_13 = arith.constant dense<0.000000e+00> : vector<8x128xf32>
    %13 = tpu.matmul %11, %12, %cst_13 {dimension_numbers = #tpu.dot_dimension_numbers<[1], [0], [0], [1], [0, 0, 1, 1], [], []>} : vector<8x256xf32>, vector<256x128xf32>, vector<8x128xf32> -> vector<8x128xf32>
    %c0_14 = arith.constant 0 : index
    %c0_15 = arith.constant 0 : index
    %14 = vector.load %arg7[%c0_14, %c0_15] : memref<1x128xf32, #tpu.memory_space<vmem>>, vector<1x128xf32>
    %15 = vector.broadcast %14 : vector<1x128xf32> to vector<8x128xf32>
    %16 = arith.addf %13, %15 : vector<8x128xf32>
    %cst_16 = arith.constant 0.000000e+00 : f32
    %17 = vector.broadcast %cst_16 : f32 to vector<8x128xf32>
    %18 = arith.maximumf %16, %17 : vector<8x128xf32>
    %c0_17 = arith.constant 0 : index
    %c0_18 = arith.constant 0 : index
    %19 = vector.load %arg8[%c0_17, %c0_18] : memref<128x64xf32, #tpu.memory_space<vmem>>, vector<128x64xf32>
    %cst_19 = arith.constant dense<0.000000e+00> : vector<8x64xf32>
    %20 = tpu.matmul %18, %19, %cst_19 {dimension_numbers = #tpu.dot_dimension_numbers<[1], [0], [0], [1], [0, 0, 1, 1], [], []>} : vector<8x128xf32>, vector<128x64xf32>, vector<8x64xf32> -> vector<8x64xf32>
    %c0_20 = arith.constant 0 : index
    %c0_21 = arith.constant 0 : index
    %21 = vector.load %arg9[%c0_20, %c0_21] : memref<1x64xf32, #tpu.memory_space<vmem>>, vector<1x64xf32>
    %22 = vector.broadcast %21 : vector<1x64xf32> to vector<8x64xf32>
    %23 = arith.addf %20, %22 : vector<8x64xf32>
    %cst_22 = arith.constant 0.000000e+00 : f32
    %24 = vector.broadcast %cst_22 : f32 to vector<8x64xf32>
    %25 = arith.maximumf %23, %24 : vector<8x64xf32>
    %c0_23 = arith.constant 0 : index
    %c0_24 = arith.constant 0 : index
    %26 = vector.load %arg10[%c0_23, %c0_24] : memref<1x64xf32, #tpu.memory_space<vmem>>, vector<1x64xf32>
    %27 = vector.broadcast %26 : vector<1x64xf32> to vector<8x64xf32>
    %28 = arith.mulf %25, %27 : vector<8x64xf32>
    %cst_25 = arith.constant dense<0.000000e+00> : vector<8xf32>
    %29 = vector.multi_reduction <add>, %28, %cst_25 [1] : vector<8x64xf32> to vector<8xf32>
    %30 = vector.shape_cast %29 : vector<8xf32> to vector<8x1xf32>
    %c0_26 = arith.constant 0 : index
    %c0_27 = arith.constant 0 : index
    %31 = vector.load %arg11[%c0_26, %c0_27] : memref<1x1xf32, #tpu.memory_space<vmem>>, vector<1x1xf32>
    %32 = vector.broadcast %31 : vector<1x1xf32> to vector<8x1xf32>
    %33 = arith.addf %30, %32 : vector<8x1xf32>
    %c0_28 = arith.constant 0 : index
    %c0_29 = arith.constant 0 : index
    %34 = vector.load %arg12[%c0_28, %c0_29] : memref<8x1xf32, #tpu.memory_space<vmem>>, vector<8x1xf32>
    tpu.vector_store %arg12[%c0_28, %c0_29], %33 {strides = array<i32>} : memref<8x1xf32, #tpu.memory_space<vmem>>, vector<8x1xf32>,
    return
  }
  func.func @transform_0(%arg0: i32) -> (i32, i32) {
    %c0_i32 = arith.constant 0 : i32
    %c0_i32_0 = arith.constant 0 : i32
    return %arg0, %c0_i32 : i32, i32
  }
  func.func @transform_1(%arg0: i32) -> (i32, i32) {
    %c0_i32 = arith.constant 0 : i32
    %c0_i32_0 = arith.constant 0 : i32
    return %arg0, %c0_i32 : i32, i32
  }
  func.func @transform_2(%arg0: i32) -> (i32, i32) {
    %c0_i32 = arith.constant 0 : i32
    %c0_i32_0 = arith.constant 0 : i32
    %c0_i32_1 = arith.constant 0 : i32
    return %c0_i32, %c0_i32_0 : i32, i32
  }
  func.func @transform_3(%arg0: i32) -> (i32, i32) {
    %c0_i32 = arith.constant 0 : i32
    %c0_i32_0 = arith.constant 0 : i32
    %c0_i32_1 = arith.constant 0 : i32
    return %c0_i32, %c0_i32_0 : i32, i32
  }
  func.func @transform_4(%arg0: i32) -> (i32, i32) {
    %c0_i32 = arith.constant 0 : i32
    %c0_i32_0 = arith.constant 0 : i32
    %c0_i32_1 = arith.constant 0 : i32
    return %c0_i32, %c0_i32_0 : i32, i32
  }
  func.func @transform_5(%arg0: i32) -> (i32, i32) {
    %c0_i32 = arith.constant 0 : i32
    %c0_i32_0 = arith.constant 0 : i32
    %c0_i32_1 = arith.constant 0 : i32
    return %c0_i32, %c0_i32_0 : i32, i32
  }
  func.func @transform_6(%arg0: i32) -> (i32, i32) {
    %c0_i32 = arith.constant 0 : i32
    %c0_i32_0 = arith.constant 0 : i32
    %c0_i32_1 = arith.constant 0 : i32
    return %c0_i32, %c0_i32_0 : i32, i32
  }
  func.func @transform_7(%arg0: i32) -> (i32, i32) {
    %c0_i32 = arith.constant 0 : i32
    %c0_i32_0 = arith.constant 0 : i32
    %c0_i32_1 = arith.constant 0 : i32
    return %c0_i32, %c0_i32_0 : i32, i32
  }
  func.func @transform_8(%arg0: i32) -> (i32, i32) {
    %c0_i32 = arith.constant 0 : i32
    %c0_i32_0 = arith.constant 0 : i32
    %c0_i32_1 = arith.constant 0 : i32
    return %c0_i32, %c0_i32_0 : i32, i32
  }
  func.func @transform_9(%arg0: i32) -> (i32, i32) {
    %c0_i32 = arith.constant 0 : i32
    %c0_i32_0 = arith.constant 0 : i32
    %c0_i32_1 = arith.constant 0 : i32
    return %c0_i32, %c0_i32_0 : i32, i32
  }
  func.func @transform_10(%arg0: i32) -> (i32, i32) {
    %c0_i32 = arith.constant 0 : i32
    %c0_i32_0 = arith.constant 0 : i32
    %c0_i32_1 = arith.constant 0 : i32
    return %c0_i32, %c0_i32_0 : i32, i32
  }
  func.func @transform_11(%arg0: i32) -> (i32, i32) {
    %c0_i32 = arith.constant 0 : i32
    %c0_i32_0 = arith.constant 0 : i32
    return %arg0, %c0_i32 : i32, i32
  }
}

</mosaic_0001>

<bundles_post_ra>
// kernel: tpu_custom_call.1
= control target key start
LH: loop header
LB: loop body
LE: loop exit
PB: predicated region body
PF: predicated region fallthrough
CT: control target
= control target key end

     0   :  { %s605_s0 = inlined_call_operand.vmem [shape: f32[8,64], index: 0, kind: input, shape index: {}]   ;;  %s606_s1 = inlined_call_operand.vmem [shape: f32[8,64], index: 1, kind: input, shape index: {}]   ;;  %s607_s2 = inlined_call_operand.vmem [shape: f32[64,256], index: 2, kind: input, shape index: {}]   ;;  %s608_s3 = inlined_call_operand.hbm [shape: f32[64,256], index: 3, kind: input, shape index: {}]   ;;  %s609_s4 = inlined_call_operand.vmem [shape: f32[1,256], index: 4, kind: input, shape index: {}]   ;;  %s610_s5 = inlined_call_operand.hbm [shape: f32[256,128], index: 5, kind: input, shape index: {}]   ;;  %s611_s6 = inlined_call_operand.vmem [shape: f32[1,128], index: 6, kind: input, shape index: {}]   ;;  %s612_s7 = inlined_call_operand.vmem [shape: f32[128,64], index: 7, kind: input, shape index: {}]   ;;  %s613_s8 = inlined_call_operand.vmem [shape: f32[1,64], index: 8, kind: input, shape index: {}]   ;;  %s614_s9 = inlined_call_operand.vmem [shape: f32[1,64], index: 9, kind: input, shape index: {}]   ;;  %s615_s10 = inlined_call_operand.<no memory space> [shape: f32[1,1], index: 10, kind: input, shape index: {}]   ;;  %s616_s11 = inlined_call_operand.vmem [shape: f32[8,1], index: 11, kind: output, shape index: {}]  }
   0x1   :  { %v16_v0 = vstv %s615_s10 }
   0x2   :  { %17 = vst [vmem:[#allocation2] sm:$0x1] %v16_v0 }
   0x3   :  { %18 = vsyncpa [#allocation4], 0  ;;  %s30_s21 = sshll.u32 %s608_s3, 4  ;;  %s31_s21 = int_to_ptr.hbm [resolvable:$true] %s30_s21 }
   0x4   :  { %19 = vsyncpa [#allocation6], 0  ;;  %s408_s22 = smov [#allocation3]   ;;  %s45_s26 = sshll.u32 %s610_s5, 4  ;;  %s46_s26 = int_to_ptr.hbm [resolvable:$true] %s45_s26 }
   0x5   :  { %s32_s23 = sshll.u32 %s408_s22, 4  ;;  %s409_s27 = smov 256   ;;  %s33_s23 = int_to_ptr.vmem [resolvable:$true] %s32_s23 }
   0x6   :  { %s410_s28 = smov 16   ;;  %s411_s10 = smov [#allocation5]  }
   0x7   :  { %38 = dma.hbm_to_vmem [thread:$0]  %s31_s21, 2048, %s33_s23, [#allocation4], %s409_s27, %s409_s27, %s410_s28  }
   0x8   :  { %s47_s29 = sshll.u32 %s411_s10, 4  ;;  %s412_s30 = smov 128   ;;  %s48_s29 = int_to_ptr.vmem [resolvable:$true] %s47_s29 }
   0x9   :  { %s413_s12 = smov 8  }
   0xa   :  { %53 = dma.hbm_to_vmem [thread:$0]  %s46_s26, 4096, %s48_s29, [#allocation6], %s412_s30, %s412_s30, %s413_s12  }
   0xb   :  { %404 = dma.done.wait [#allocation4], 2048  }
   0xc   :  { %405 = vsyncadd [#allocation4], 4294965248 }
   0xd   :  { %406 = dma.done.wait [#allocation6], 4096  }
   0xe   :  { %407 = vsyncadd [#allocation6], 4294963200  ;;  %v104_v1 = vld [vmem:[#allocation3 + $0x70] sm:$0xff]  ;;  %v102_v2 = vld [vmem:[#allocation3 + $0x60] sm:$0xff]  ;;  %vm106_vm0 = vcmask 523264   ;;  %vm334_vm1 = vcmask 7168  }
   0xf   :  { %118 = vmatpush.msra.mxu3 %v104_v1  ;;  %v88_v3 = vld [vmem:[%s607_s2 + $0x70] sm:$0xff]  ;;  %v86_v5 = vld [vmem:[%s607_s2 + $0x60] sm:$0xff]  ;;  %v89_v23 = vld [vmem:[%s607_s2 + $0x78] sm:$0xff] }
  0x10   :  { %v100_v4 = vld [vmem:[#allocation3 + $0x50] sm:$0xff]  ;;  %161 = vmatpush.msra.mxu2 %v88_v3  ;;  %v98_v7 = vld [vmem:[#allocation3 + $0x40] sm:$0xff]  ;;  %v105_v10 = vld [vmem:[#allocation3 + $0x78] sm:$0xff] }
  0x11   :  { %119 = vmatpush.msra.mxu3 %v102_v2  ;;  %v84_v6 = vld [vmem:[%s607_s2 + $0x50] sm:$0xff]  ;;  %v82_v8 = vld [vmem:[%s607_s2 + $0x40] sm:$0xff]  ;;  %138 = vmatpush.msra.mxu1 %v105_v10  ;;  %v87_v27 = vld [vmem:[%s607_s2 + $0x68] sm:$0xff] }
  0x12   :  { %162 = vmatpush.msra.mxu2 %v86_v5  ;;  %v96_v9 = vld [vmem:[#allocation3 + $0x30] sm:$0xff]  ;;  %v103_v12 = vld [vmem:[#allocation3 + $0x68] sm:$0xff]  ;;  %v94_v13 = vld [vmem:[#allocation3 + $0x20] sm:$0xff] }
  0x13   :  { %120 = vmatpush.msra.mxu3 %v100_v4  ;;  %v80_v11 = vld [vmem:[%s607_s2 + $0x30] sm:$0xff]  ;;  %v101_v14 = vld [vmem:[#allocation3 + $0x58] sm:$0xff]  ;;  %139 = vmatpush.msra.mxu1 %v103_v12  ;;  %v90_v21 = vld [vmem:[#allocation3] sm:$0xff] }
  0x14   :  { %163 = vmatpush.msra.mxu2 %v84_v6  ;;  %v78_v15 = vld [vmem:[%s607_s2 + $0x20] sm:$0xff]  ;;  %v92_v16 = vld [vmem:[#allocation3 + $0x10] sm:$0xff]  ;;  %v99_v17 = vld [vmem:[#allocation3 + $0x48] sm:$0xff] }
  0x15   :  { %121 = vmatpush.msra.mxu3 %v98_v7  ;;  %v76_v18 = vld [vmem:[%s607_s2 + $0x10] sm:$0xff]  ;;  %140 = vmatpush.msra.mxu1 %v101_v14  ;;  %v218_v19 = vld [vmem:[#allocation5 + $0x78] sm:$0xff]  ;;  %v215_v32 = vld [vmem:[#allocation5 + $0x60] sm:$0xff] }
  0x16   :  { %164 = vmatpush.msra.mxu2 %v82_v8  ;;  %v217_v20 = vld [vmem:[#allocation5 + $0x70] sm:$0xff]  ;;  %v97_v22 = vld [vmem:[#allocation3 + $0x38] sm:$0xff]  ;;  %239 = vmatpush.msra.mxu0 %v218_v19  ;;  %v95_v28 = vld [vmem:[#allocation3 + $0x28] sm:$0xff] }
  0x17   :  { %122 = vmatpush.msra.mxu3 %v96_v9  ;;  %v74_v24 = vld [vmem:[%s607_s2] sm:$0xff]  ;;  %141 = vmatpush.msra.mxu1 %v99_v17  ;;  %v216_v29 = vld [vmem:[#allocation5 + $0x68] sm:$0xff]  ;;  %v85_v30 = vld [vmem:[%s607_s2 + $0x58] sm:$0xff] }
  0x18   :  { %165 = vmatpush.msra.mxu2 %v80_v11  ;;  %v73_v25 = vld [vmem:[%s606_s1] sm:$0xff]  ;;  %240 = vmatpush.msra.mxu0 %v217_v20  ;;  %v83_v33 = vld [vmem:[%s607_s2 + $0x48] sm:$0xff]  ;;  %v81_v36 = vld [vmem:[%s607_s2 + $0x38] sm:$0xff] }
  0x19   :  { %123 = vmatpush.msra.mxu3 %v94_v13  ;;  %v72_v26 = vld [vmem:[%s605_s0] sm:$0xff]  ;;  %142 = vmatpush.msra.mxu1 %v97_v22  ;;  %v91_v34 = vld [vmem:[#allocation3 + $0x8] sm:$0xff]  ;;  %v213_v38 = vld [vmem:[#allocation5 + $0x50] sm:$0xff] }
  0x1a   :  { %166 = vmatpush.msra.mxu2 %v78_v15  ;;  %v93_v31 = vld [vmem:[#allocation3 + $0x18] sm:$0xff]  ;;  %241 = vmatpush.msra.mxu0 %v216_v29  ;;  %v79_v39 = vld [vmem:[%s607_s2 + $0x28] sm:$0xff]  ;;  %v233_v40 = vld [vmem:[#allocation5 + $0xf0] sm:$0xff] }
  0x1b   :  { %124 = vmatpush.msra.mxu3 %v92_v16  ;;  %143 = vmatpush.msra.mxu1 %v95_v28  ;;  %v214_v35 = vld [vmem:[#allocation5 + $0x58] sm:$0xff]  ;;  %v212_v41 = vld [vmem:[#allocation5 + $0x48] sm:$0xff]  ;;  %v211_v44 = vld [vmem:[#allocation5 + $0x40] sm:$0xff] }
  0x1c   :  { %167 = vmatpush.msra.mxu2 %v76_v18  ;;  %242 = vmatpush.msra.mxu0 %v215_v32  ;;  %v234_v37 = vld [vmem:[#allocation5 + $0xf8] sm:$0xff]  ;;  %v232_v43 = vld [vmem:[#allocation5 + $0xe8] sm:$0xff]  ;;  %v231_v46 = vld [vmem:[#allocation5 + $0xe0] sm:$0xff] }
  0x1d   :  { %125 = vmatpush.msra.mxu3 %v90_v21  ;;  %144 = vmatpush.msra.mxu1 %v93_v31  ;;  %v77_v42 = vld [vmem:[%s607_s2 + $0x18] sm:$0xff]  ;;  %v75_v45 = vld [vmem:[%s607_s2 + $0x8] sm:$0xff]  ;;  %v294_v4 = vld [vmem:[%s612_s7 + $0x70] sm:$0xff] }
  0x1e   :  { %168 = vmatpush.msra.mxu2 %v74_v24  ;;  %342 = vmatmul.msk.f32.vlgmr.msra.gmra.mxu3 %vm106_vm0, %v73_v25  ;;  %v210_v47 = vld [vmem:[#allocation5 + $0x38] sm:$0xff]  ;;  %v209_v49 = vld [vmem:[#allocation5 + $0x30] sm:$0xff]  ;;  %v208_v51 = vld [vmem:[#allocation5 + $0x28] sm:$0xff] }
  0x1f   :  { %181 = vmatpush.msrb.mxu3 %v89_v23  ;;  %344 = vmatmul.msk.f32.vlgmr.msra.gmra.mxu2 %vm106_vm0, %v72_v26  ;;  %v230_v48 = vld [vmem:[#allocation5 + $0xd8] sm:$0xff]  ;;  %v229_v50 = vld [vmem:[#allocation5 + $0xd0] sm:$0xff]  ;;  %v228_v52 = vld [vmem:[#allocation5 + $0xc8] sm:$0xff] }
  0x20   :  { %145 = vmatpush.msra.mxu1 %v91_v34  ;;  %243 = vmatpush.msra.mxu0 %v214_v35  ;;  %v207_v53 = vld [vmem:[#allocation5 + $0x20] sm:$0xff]  ;;  %v206_v55 = vld [vmem:[#allocation5 + $0x18] sm:$0xff]  ;;  %v205_v57 = vld [vmem:[#allocation5 + $0x10] sm:$0xff] }
  0x21   :  { %182 = vmatpush.msrb.mxu3 %v87_v27  ;;  %343 = vmatmul.msk.f32.vlgmr.msra.gmra.mxu1 %vm106_vm0, %v73_v25  ;;  %v227_v54 = vld [vmem:[#allocation5 + $0xc0] sm:$0xff]  ;;  %v226_v56 = vld [vmem:[#allocation5 + $0xb8] sm:$0xff]  ;;  %v225_v58 = vld [vmem:[#allocation5 + $0xb0] sm:$0xff] }
  0x22   :  { %259 = vmatpush.msrb.mxu1 %v234_v37  ;;  %244 = vmatpush.msra.mxu0 %v213_v38  ;;  %v204_v59 = vld [vmem:[#allocation5 + $0x8] sm:$0xff]  ;;  %v203_v61 = vld [vmem:[#allocation5] sm:$0xff]  ;;  %v222_v63 = vld [vmem:[#allocation5 + $0x98] sm:$0xff] }
  0x23   :  { %183 = vmatpush.msrb.mxu3 %v85_v30  ;;  %v224_v60 = vld [vmem:[#allocation5 + $0xa8] sm:$0xff]  ;;  %v223_v62 = vld [vmem:[#allocation5 + $0xa0] sm:$0xff]  ;;  %v221_v0 = vld [vmem:[#allocation5 + $0x90] sm:$0xff] }
  0x24   :  { %260 = vmatpush.msrb.mxu1 %v233_v40  ;;  %245 = vmatpush.msra.mxu0 %v212_v41  ;;  %v220_v1 = vld [vmem:[#allocation5 + $0x88] sm:$0xff]  ;;  %v219_v2 = vld [vmem:[#allocation5 + $0x80] sm:$0xff]  ;;  %v295_v3 = vld [vmem:[%s612_s7 + $0x78] sm:$0xff] }
  0x25   :  { %184 = vmatpush.msrb.mxu3 %v83_v33  ;;  %300 = vmatpush.msrb.mxu2 %v295_v3  ;;  %v293_v5 = vld [vmem:[%s612_s7 + $0x68] sm:$0xff]  ;;  %v292_v6 = vld [vmem:[%s612_s7 + $0x60] sm:$0xff]  ;;  %v291_v7 = vld [vmem:[%s612_s7 + $0x58] sm:$0xff] }
  0x26   :  { %261 = vmatpush.msrb.mxu1 %v232_v43  ;;  %246 = vmatpush.msra.mxu0 %v211_v44  ;;  %v193_v8 = vld [vmem:[%s609_s4] sm:$0x3]  ;;  %v290_v9 = vld [vmem:[%s612_s7 + $0x50] sm:$0xff]  ;;  %v289_v11 = vld [vmem:[%s612_s7 + $0x48] sm:$0xff] }
  0x27   :  { %185 = vmatpush.msrb.mxu3 %v81_v36  ;;  %301 = vmatpush.msrb.mxu2 %v294_v4  ;;  %v195_v10 = vperm.slane %v193_v8, 0  ;;  %v288_v15 = vld [vmem:[%s612_s7 + $0x40] sm:$0xff]  ;;  %v287_v17 = vld [vmem:[%s612_s7 + $0x38] sm:$0xff]  ;;  %v196_v20 = vperm.slane %v193_v8, 1  ;;  %v286_v25 = vld [vmem:[%s612_s7 + $0x30] sm:$0xff] }
  0x28   :  { %262 = vmatpush.msrb.mxu1 %v231_v46  ;;  %247 = vmatpush.msra.mxu0 %v210_v47  ;;  %v284_v27 = vld [vmem:[%s612_s7 + $0x20] sm:$0xff]  ;;  %v283_v28 = vld [vmem:[%s612_s7 + $0x18] sm:$0xff]  ;;  %v282_v29 = vld [vmem:[%s612_s7 + $0x10] sm:$0xff] }
  0x29   :  { %186 = vmatpush.msrb.mxu3 %v79_v39  ;;  %302 = vmatpush.msrb.mxu2 %v293_v5  ;;  %v281_v30 = vld [vmem:[%s612_s7 + $0x8] sm:$0xff]  ;;  %v280_v31 = vld [vmem:[%s612_s7] sm:$0xff] }
  0x2a   :  { %263 = vmatpush.msrb.mxu1 %v230_v48  ;;  %248 = vmatpush.msra.mxu0 %v209_v49  ;;  %v352_v32 = vld [vmem:[%s611_s6] ss:$0 sm:$0xff] }
  0x2b   :  { %187 = vmatpush.msrb.mxu3 %v77_v42  ;;  %303 = vmatpush.msrb.mxu2 %v292_v6  ;;  %v353_v38 = vld [vmem:[%s613_s8] ss:$0 sm:$0xff] }
  0x2c   :  { %264 = vmatpush.msrb.mxu1 %v229_v50  ;;  %249 = vmatpush.msra.mxu0 %v208_v51  ;;  %v354_v41 = vld [vmem:[%s614_s9] ss:$0 sm:$0xff] }
  0x2d   :  { %188 = vmatpush.msrb.mxu3 %v75_v45  ;;  %304 = vmatpush.msrb.mxu2 %v291_v7  ;;  %v355_v45 = vld [vmem:[#allocation2] ss:$0 sm:$0xff] }
  0x2e   :  { %345 = vmatmul.msk.f32.vlgmr.msrb.gmra.mxu3 %vm106_vm0, %v72_v26  ;;  %265 = vmatpush.msrb.mxu1 %v228_v52  ;;  %v285_v26 = vld [vmem:[%s612_s7 + $0x28] sm:$0xff] }
  0x2f   :  { %250 = vmatpush.msra.mxu0 %v207_v53  ;;  %305 = vmatpush.msrb.mxu2 %v290_v9 }
  0x30   :  { %266 = vmatpush.msrb.mxu1 %v227_v54 }
  0x31   :  { %251 = vmatpush.msra.mxu0 %v206_v55  ;;  %306 = vmatpush.msrb.mxu2 %v289_v11 }
  0x32   :  { %267 = vmatpush.msrb.mxu1 %v226_v56 }
  0x33   :  { %252 = vmatpush.msra.mxu0 %v205_v57  ;;  %307 = vmatpush.msrb.mxu2 %v288_v15 }
  0x34   :  { %268 = vmatpush.msrb.mxu1 %v225_v58 }
  0x35   :  { %253 = vmatpush.msra.mxu0 %v204_v59  ;;  %308 = vmatpush.msrb.mxu2 %v287_v17 }
  0x36   :  { %269 = vmatpush.msrb.mxu1 %v224_v60 }
  0x37   :  { %254 = vmatpush.msra.mxu0 %v203_v61  ;;  %309 = vmatpush.msrb.mxu2 %v286_v25 }
  0x38   :  { %270 = vmatpush.msrb.mxu1 %v223_v62 }
  0x39   :  { %310 = vmatpush.msrb.mxu2 %v285_v26 }
  0x3a   :  { %271 = vmatpush.msrb.mxu1 %v222_v63 }
  0x3b   :  { %311 = vmatpush.msrb.mxu2 %v284_v27 }
  0x3c   :  { %272 = vmatpush.msrb.mxu1 %v221_v0 }
  0x3d   :  { %312 = vmatpush.msrb.mxu2 %v283_v28 }
  0x3e   :  { %273 = vmatpush.msrb.mxu1 %v220_v1 }
  0x3f   :  { %313 = vmatpush.msrb.mxu2 %v282_v29 }
  0x40   :  { %274 = vmatpush.msrb.mxu1 %v219_v2 }
  0x41   :  { %314 = vmatpush.msrb.mxu2 %v281_v30 }
  0x43   :  { %315 = vmatpush.msrb.mxu2 %v280_v31 }
  0x9e   :  { %v147_v19 = vpop.f32.mrf.mxu1 }
  0xa1   :  { %v127_v12 = vpop.f32.mrf.mxu3 }
  0xa2   :  { %v170_v13 = vpop.f32.mrf.mxu2 }
  0xa3   :  { %v171_v14 = vadd.f32 %v170_v13, %v127_v12 }
  0xa5   :  { %v199_v16 = vadd.f32 %v195_v10, %v171_v14 }
  0xa7   :  { %v201_v18 = vmax.f32 %v199_v16, 0.0 }
  0xa9   :  { %255 = vmatmul.f32.vlgmr.msra.gmra.mxu0 %v201_v18 }
  0xb1   :  { %v190_v21 = vpop.f32.mrf.mxu3 }
  0xb2   :  { %v191_v22 = vadd.f32 %v190_v21, %v147_v19 }
  0xb4   :  { %v200_v23 = vadd.f32 %v196_v20, %v191_v22 }
  0xb6   :  { %v202_v24 = vmax.f32 %v200_v23, 0.0 }
  0xb8   :  { %275 = vmatmul.f32.vlgmr.msrb.gmra.mxu1 %v202_v24 }
 0x126   :  { %v256_v33 = vpop.f32.mrf.mxu0 }
 0x127   :  { %v257_v34 = vadd.f32 %v352_v32, %v256_v33 }
 0x135   :  { %v276_v35 = vpop.f32.mrf.mxu1 }
 0x136   :  { %v277_v36 = vadd.f32 %v276_v35, %v257_v34 }
 0x138   :  { %v279_v37 = vmax.f32 %v277_v36, 0.0 }
 0x13a   :  { %316 = vmatmul.f32.vlgmr.msrb.gmra.mxu2 %v279_v37 }
 0x1bd   :  { %v317_v39 = vpop.f32.mrf.mxu2 }
 0x1be   :  { %v318_v40 = vadd.f32 %v353_v38, %v317_v39 }
 0x1c0   :  { %v320_v42 = vmax.f32 %v318_v40, 0.0 }
 0x1c2   :  { %v325_v43 = vmul.f32 %v354_v41, %v320_v42 }
 0x1c4   :  { %v326_v44 = vsel %vm106_vm0, %v325_v43, 0.0 }
 0x1c5   :  { %327 = vadd.xlane.f32.xlu0 %v326_v44 }
 0x238   :  { %v328_v46 = vpop.xlane.xlu0 %327 }
 0x239   :  { %v333_v47 = vadd.f32 %v355_v45, %v328_v46 }
 0x23b   :  { %335 = vst.msk [vmem:[%s616_s11] sm:$0xff] %vm334_vm1, %v333_v47 }
 0x23c   :  { %340 = vsyncpa [#allocation4], 1 }
 0x23d   :  { %341 = vsyncpa [#allocation6], 1 }

</bundles_post_ra>
